<compile_context>
chip_gen: v6e
topology: v6e:2x2x1
jax: 0.10.0
libtpu: 0.0.40
codegen_flags: <defaults>
</compile_context>

<pallas_src>
import functools

import jax
import jax.numpy as jnp
from jax.experimental import pallas as pl
from jax.experimental.pallas import tpu as pltpu

ALPHA = 0.75
GAMMA = 2.0
LANES = 128
SUBLANES = 8


def _round_up(x, m):
    return (x + m - 1) // m * m


def _tensorcores_per_device():
    """2 TensorCores per device on v7x; 1 on v5e/v6e."""
    try:
        kind = jax.devices()[0].device_kind.lower()
    except Exception:
        return 1
    return 2 if "v7" in kind else 1


def _focal_loss_kernel(x_ref, t_ref, out_ref, *,
                       alpha, gamma, full_rows, rem_lanes, hard_targets):
    c = pl.program_id(0)          # core axis (CORE_PARALLEL on v7x)
    i = pl.program_id(1)          # reduction axis (arbitrary, last)
    steps = pl.num_programs(1)
    block_rows = x_ref.shape[0]

    @pl.when(i == 0)
    def _():
        out_ref[...] = jnp.zeros_like(out_ref)

    x = x_ref[...].astype(jnp.float32)
    t = t_ref[...].astype(jnp.float32)

    # Numerically stable BCE-with-logits (== F.binary_cross_entropy_with_logits):
    #   bce = max(x, 0) - x*t + log(1 + exp(-|x|))
    e1 = jnp.exp(-jnp.abs(x))
    bce = jnp.maximum(x, 0.0) - x * t + jnp.log1p(e1)

    if hard_targets:
        # Hard-target (t in {0,1}) fast path: pt without the third exp.
        # sigmoid(x) = 1/(1+e1) for x>=0, e1/(1+e1) for x<0;  pt = sig if t==1 else 1-sig.
        s = pl.reciprocal(1.0 + e1, approx=True)
        sig = jnp.where(x >= 0.0, s, e1 * s)
        pt = jnp.where(t >= 0.5, sig, 1.0 - sig)
    else:
        pt = jnp.exp(-bce)        # exact module semantics (soft targets allowed)

    d = 1.0 - pt
    if gamma == 2.0:
        mod = d * d               # avoid float pow (log+exp on the EUP)
    elif gamma == 1.0:
        mod = d
    else:
        mod = d ** gamma
    focal = alpha * mod * bce

    # Logical first row of this tile in the (rows, 128) slab.  Uses the
    # UNCLAMPED tile index so clamped duplicate tiles are fully masked out.
    tile_row0 = (c * steps + i) * block_rows
    tile_needs_mask = (tile_row0 + block_rows) > full_rows

    @pl.when(jnp.logical_not(tile_needs_mask))
    def _():
        # Interior tile: fully valid, no mask math on the hot path.
        out_ref[...] += focal.reshape(-1, SUBLANES, LANES).sum(axis=0, keepdims=True)

    @pl.when(tile_needs_mask)
    def _():
        # Boundary tile: mask (before the sum!) rows >= full_rows and the
        # partial last row's lanes; also kills any undefined partial-block data.
        row = tile_row0 + jax.lax.broadcasted_iota(jnp.int32, focal.shape, 0)
        col = jax.lax.broadcasted_iota(jnp.int32, focal.shape, 1)
        lanes_valid = jnp.where(row < full_rows, LANES,
                                jnp.where(row == full_rows, rem_lanes, 0))
        masked = jnp.where(col < lanes_valid, focal, 0.0)
        out_ref[...] += masked.reshape(-1, SUBLANES, LANES).sum(axis=0, keepdims=True)


def focal_loss_3d(inputs, targets, alpha=ALPHA, gamma=GAMMA,
                  block_rows=4096, hard_targets=False):
    """Mean focal loss.  inputs may be f32/bf16 logits; targets may be
    f32/bf16/uint8/bool — both are streamed in their native dtype and cast
    in-VMEM."""
    assert inputs.shape == targets.shape
    n_valid = int(inputs.size)

    x = inputs.reshape(-1)
    t = targets.reshape(-1)

    # Pad only when necessary so the flat array reshapes to (rows, 128) with
    # rows a multiple of 8.  For typical shapes this is a pure view.
    n_padded = _round_up(n_valid, SUBLANES * LANES)
    if n_padded != n_valid:
        x = jnp.pad(x, (0, n_padded - n_valid))
        t = jnp.pad(t, (0, n_padded - n_valid))

    rows = n_padded // LANES
    x2 = x.reshape(rows, LANES)
    t2 = t.reshape(rows, LANES)

    # Row tile: full array if it fits in one block, else a multiple of 32 rows
    # (satisfies the (32,128) int8/bool min-tile as well as f32/bf16).
    if rows <= block_rows:
        block_rows = rows
    else:
        block_rows = _round_up(block_rows, 32)

    nblocks = pl.cdiv(rows, block_rows)
    num_cores = _tensorcores_per_device()
    if nblocks < 2:
        num_cores = 1
    steps = pl.cdiv(nblocks, num_cores)
    last_block = nblocks - 1

    def in_map(c, i):
        # Clamp excess tiles (when num_cores doesn't divide nblocks) onto the
        # last block; the kernel's row mask zeroes their contribution.
        return (jnp.minimum(c * steps + i, last_block), 0)

    kernel = functools.partial(
        _focal_loss_kernel,
        alpha=float(alpha), gamma=float(gamma),
        full_rows=n_valid // LANES, rem_lanes=n_valid % LANES,
        hard_targets=bool(hard_targets),
    )

    # Compiler params: CORE_PARALLEL on the leading axis only when we actually
    # split across TensorCores (v7x); explicit VMEM limit only when the
    # double-buffered working set would exceed v5e's 16 MiB default.
    core_sem = pltpu.CORE_PARALLEL if num_cores > 1 else pltpu.ARBITRARY
    itemsize_x = x2.dtype.itemsize
    itemsize_t = t2.dtype.itemsize
    vmem_need = 2 * block_rows * LANES * (itemsize_x + itemsize_t) + (2 << 20)
    compiler_kwargs = {"dimension_semantics": (core_sem, pltpu.ARBITRARY)}
    if vmem_need > (16 << 20):
        compiler_kwargs["vmem_limit_bytes"] = int(min(vmem_need, 64 << 20))

    cost = pl.CostEstimate(
        flops=12 * n_padded,
        transcendentals=(2 if hard_targets else 3) * n_padded,
        bytes_accessed=int(n_padded * (itemsize_x + itemsize_t)
                           + num_cores * SUBLANES * LANES * 4),
    )

    # Output = per-core (8,128) vreg-shaped partial-sum accumulator (lane-dense
    # store); final cross-lane reduce and the mean happen in the wrapper.
    partial = pl.pallas_call(
        kernel,
        out_shape=jax.ShapeDtypeStruct((num_cores, SUBLANES, LANES), jnp.float32),
        grid_spec=pltpu.PrefetchScalarGridSpec(
            num_scalar_prefetch=0,
            grid=(num_cores, steps),
            in_specs=[
                pl.BlockSpec((block_rows, LANES), in_map),
                pl.BlockSpec((block_rows, LANES), in_map),
            ],
            out_specs=pl.BlockSpec((1, SUBLANES, LANES), lambda c, i: (c, 0, 0)),
        ),
        compiler_params=pltpu.CompilerParams(**compiler_kwargs),
        cost_estimate=cost,
    )(x2, t2)

    # reduction='mean' over the original (unpadded) element count.
    # TODO(synk): for >=1e9-element volumes consider a pairwise combine of the
    # per-tile sums to tighten accumulation error vs the XLA tree reduction.
    return jnp.sum(partial) / jnp.float32(n_valid)


def focal_loss_3d_ref(inputs, targets, alpha=ALPHA, gamma=GAMMA):
    x = inputs.astype(jnp.float32)
    t = targets.astype(jnp.float32)
    bce = jnp.maximum(x, 0.0) - x * t + jnp.log1p(jnp.exp(-jnp.abs(x)))
    pt = jnp.exp(-bce)
    return jnp.mean(alpha * (1.0 - pt) ** gamma * bce)


if __name__ == "__main__":
    key = jax.random.PRNGKey(0)
    k1, k2 = jax.random.split(key)
    # 3D segmentation-style logits/targets: [B, C, D, H, W]
    shape = (2, 1, 8, 16, 16)
    inputs = jax.random.normal(k1, shape, dtype=jnp.float32) * 2.0
    targets = (jax.random.uniform(k2, shape) > 0.7).astype(jnp.float32)

    # 1) Exact path, f32 inputs.
    loss = jax.block_until_ready(focal_loss_3d(inputs, targets))
    ref = jax.block_until_ready(focal_loss_3d_ref(inputs, targets))
    assert jnp.allclose(loss, ref, rtol=1e-5, atol=1e-6), (loss, ref)

    # 2) Narrow-dtype streaming path: bf16 logits + uint8 targets (cast in-VMEM).
    inputs_bf16 = inputs.astype(jnp.bfloat16)
    targets_u8 = targets.astype(jnp.uint8)
    loss_nw = jax.block_until_ready(focal_loss_3d(inputs_bf16, targets_u8))
    ref_nw = jax.block_until_ready(focal_loss_3d_ref(inputs_bf16, targets_u8))
    assert jnp.allclose(loss_nw, ref_nw, rtol=1e-4, atol=1e-6), (loss_nw, ref_nw)

    # 3) Hard-target EUP fast path (flag-gated; approx reciprocal => looser tol).
    loss_hard = jax.block_until_ready(focal_loss_3d(inputs, targets, hard_targets=True))
    assert jnp.allclose(loss_hard, ref, rtol=5e-3, atol=1e-5), (loss_hard, ref)

    print("KERNEL_OK")
</pallas_src>

<mosaic_0001>
module attributes {stable_mosaic.version = 11 : i64} {
  func.func @_focal_loss_kernel(%arg0: i32, %arg1: i32, %arg2: memref<32x128xf32, #tpu.memory_space<vmem>>, %arg3: memref<32x128xf32, #tpu.memory_space<vmem>>, %arg4: memref<1x8x128xf32, #tpu.memory_space<vmem>>) attributes {dimension_semantics = [#tpu.dimension_semantics<arbitrary>, #tpu.dimension_semantics<arbitrary>], iteration_bounds = array<i64: 1, 1>, scalar_prefetch = 0 : i64, scratch_operands = 0 : i64, tpu.core_type = #tpu.core_type<tc>, window_params = [{transform_indices = @transform_0, window_bounds = array<i64: 32, 128>}, {transform_indices = @transform_1, window_bounds = array<i64: 32, 128>}, {transform_indices = @transform_2, window_bounds = array<i64: 1, 8, 128>}]} {
    %c0_i32 = arith.constant 0 : i32
    %0 = arith.cmpi eq, %arg1, %c0_i32 : i32
    %1 = arith.extui %0 : i1 to i32
    %c0_i32_0 = arith.constant 0 : i32
    %2 = arith.cmpi ne, %1, %c0_i32_0 : i32
    scf.if %2 {
      %cst_12 = arith.constant 0.000000e+00 : f32
      %34 = vector.broadcast %cst_12 : f32 to vector<1x8x128xf32>
      %c0_13 = arith.constant 0 : index
      %c0_14 = arith.constant 0 : index
      %c0_15 = arith.constant 0 : index
      %35 = vector.load %arg4[%c0_13, %c0_14, %c0_15] : memref<1x8x128xf32, #tpu.memory_space<vmem>>, vector<1x8x128xf32>
      tpu.vector_store %arg4[%c0_13, %c0_14, %c0_15], %34 {strides = array<i32>} : memref<1x8x128xf32, #tpu.memory_space<vmem>>, vector<1x8x128xf32>,
    } else {
    }
    %c0 = arith.constant 0 : index
    %c0_1 = arith.constant 0 : index
    %3 = vector.load %arg2[%c0, %c0_1] : memref<32x128xf32, #tpu.memory_space<vmem>>, vector<32x128xf32>
    %c0_2 = arith.constant 0 : index
    %c0_3 = arith.constant 0 : index
    %4 = vector.load %arg3[%c0_2, %c0_3] : memref<32x128xf32, #tpu.memory_space<vmem>>, vector<32x128xf32>
    %5 = math.absf %3 : vector<32x128xf32>
    %cst = arith.constant 0.000000e+00 : f32
    %6 = vector.broadcast %cst : f32 to vector<32x128xf32>
    %7 = arith.subf %6, %5 : vector<32x128xf32>
    %8 = math.exp %7 : vector<32x128xf32>
    %cst_4 = arith.constant 0.000000e+00 : f32
    %9 = vector.broadcast %cst_4 : f32 to vector<32x128xf32>
    %10 = arith.maximumf %3, %9 : vector<32x128xf32>
    %11 = arith.mulf %3, %4 : vector<32x128xf32>
    %12 = arith.subf %10, %11 : vector<32x128xf32>
    %13 = math.log1p %8 : vector<32x128xf32>
    %14 = arith.addf %12, %13 : vector<32x128xf32>
    %cst_5 = arith.constant 0.000000e+00 : f32
    %15 = vector.broadcast %cst_5 : f32 to vector<32x128xf32>
    %16 = arith.subf %15, %14 : vector<32x128xf32>
    %17 = math.exp %16 : vector<32x128xf32>
    %cst_6 = arith.constant 1.000000e+00 : f32
    %18 = vector.broadcast %cst_6 : f32 to vector<32x128xf32>
    %19 = arith.subf %18, %17 : vector<32x128xf32>
    %20 = arith.mulf %19, %19 : vector<32x128xf32>
    %cst_7 = arith.constant 7.500000e-01 : f32
    %21 = vector.broadcast %cst_7 : f32 to vector<32x128xf32>
    %22 = arith.mulf %21, %20 : vector<32x128xf32>
    %23 = arith.mulf %22, %14 : vector<32x128xf32>
    %c1_i32 = arith.constant 1 : i32
    %24 = arith.muli %arg0, %c1_i32 : i32
    %25 = arith.addi %24, %arg1 : i32
    %c32_i32 = arith.constant 32 : i32
    %26 = arith.muli %25, %c32_i32 : i32
    %c32_i32_8 = arith.constant 32 : i32
    %27 = arith.addi %26, %c32_i32_8 : i32
    %c32_i32_9 = arith.constant 32 : i32
    %28 = arith.cmpi sgt, %27, %c32_i32_9 : i32
    %true = arith.constant true
    %29 = arith.xori %28, %true : i1
    %30 = arith.extui %29 : i1 to i32
    %c0_i32_10 = arith.constant 0 : i32
    %31 = arith.cmpi ne, %30, %c0_i32_10 : i32
    scf.if %31 {
      %c0_12 = arith.constant 0 : index
      %c0_13 = arith.constant 0 : index
      %c0_14 = arith.constant 0 : index
      %34 = vector.load %arg4[%c0_12, %c0_13, %c0_14] : memref<1x8x128xf32, #tpu.memory_space<vmem>>, vector<1x8x128xf32>
      %35 = vector.shape_cast %23 : vector<32x128xf32> to vector<4x8x128xf32>
      %cst_15 = arith.constant dense<0.000000e+00> : vector<8x128xf32>
      %36 = vector.multi_reduction <add>, %35, %cst_15 [0] : vector<4x8x128xf32> to vector<8x128xf32>
      %37 = vector.shape_cast %36 : vector<8x128xf32> to vector<1x8x128xf32>
      %38 = arith.addf %34, %37 : vector<1x8x128xf32>
      %c0_16 = arith.constant 0 : index
      %c0_17 = arith.constant 0 : index
      %c0_18 = arith.constant 0 : index
      %39 = vector.load %arg4[%c0_16, %c0_17, %c0_18] : memref<1x8x128xf32, #tpu.memory_space<vmem>>, vector<1x8x128xf32>
      tpu.vector_store %arg4[%c0_16, %c0_17, %c0_18], %38 {strides = array<i32>} : memref<1x8x128xf32, #tpu.memory_space<vmem>>, vector<1x8x128xf32>,
    } else {
    }
    %32 = arith.extui %28 : i1 to i32
    %c0_i32_11 = arith.constant 0 : i32
    %33 = arith.cmpi ne, %32, %c0_i32_11 : i32
    scf.if %33 {
      %34 = tpu.iota {dimensions = array<i32: 0>} : vector<32x128xi32>
      %35 = vector.broadcast %26 : i32 to vector<32x128xi32>
      %36 = arith.addi %35, %34 : vector<32x128xi32>
      %37 = tpu.iota {dimensions = array<i32: 1>} : vector<32x128xi32>
      %c32_i32_12 = arith.constant 32 : i32
      %38 = vector.broadcast %c32_i32_12 : i32 to vector<32x128xi32>
      %39 = arith.cmpi slt, %36, %38 : vector<32x128xi32>
      %c32_i32_13 = arith.constant 32 : i32
      %40 = vector.broadcast %c32_i32_13 : i32 to vector<32x128xi32>
      %41 = arith.cmpi eq, %36, %40 : vector<32x128xi32>
      %c0_i32_14 = arith.constant 0 : i32
      %c0_i32_15 = arith.constant 0 : i32
      %42 = vector.broadcast %c0_i32_14 : i32 to vector<32x128xi32>
      %43 = vector.broadcast %c0_i32_15 : i32 to vector<32x128xi32>
      %44 = arith.select %41, %42, %43 : vector<32x128xi1>, vector<32x128xi32>
      %c128_i32 = arith.constant 128 : i32
      %45 = vector.broadcast %c128_i32 : i32 to vector<32x128xi32>
      %46 = arith.select %39, %45, %44 : vector<32x128xi1>, vector<32x128xi32>
      %47 = arith.cmpi slt, %37, %46 : vector<32x128xi32>
      %cst_16 = arith.constant 0.000000e+00 : f32
      %48 = vector.broadcast %cst_16 : f32 to vector<32x128xf32>
      %49 = arith.select %47, %23, %48 : vector<32x128xi1>, vector<32x128xf32>
      %c0_17 = arith.constant 0 : index
      %c0_18 = arith.constant 0 : index
      %c0_19 = arith.constant 0 : index
      %50 = vector.load %arg4[%c0_17, %c0_18, %c0_19] : memref<1x8x128xf32, #tpu.memory_space<vmem>>, vector<1x8x128xf32>
      %51 = vector.shape_cast %49 : vector<32x128xf32> to vector<4x8x128xf32>
      %cst_20 = arith.constant dense<0.000000e+00> : vector<8x128xf32>
      %52 = vector.multi_reduction <add>, %51, %cst_20 [0] : vector<4x8x128xf32> to vector<8x128xf32>
      %53 = vector.shape_cast %52 : vector<8x128xf32> to vector<1x8x128xf32>
      %54 = arith.addf %50, %53 : vector<1x8x128xf32>
      %c0_21 = arith.constant 0 : index
      %c0_22 = arith.constant 0 : index
      %c0_23 = arith.constant 0 : index
      %55 = vector.load %arg4[%c0_21, %c0_22, %c0_23] : memref<1x8x128xf32, #tpu.memory_space<vmem>>, vector<1x8x128xf32>
      tpu.vector_store %arg4[%c0_21, %c0_22, %c0_23], %54 {strides = array<i32>} : memref<1x8x128xf32, #tpu.memory_space<vmem>>, vector<1x8x128xf32>,
    } else {
    }
    return
  }
  func.func @transform_0(%arg0: i32, %arg1: i32) -> (i32, i32) {
    %c1_i32 = arith.constant 1 : i32
    %0 = arith.muli %arg0, %c1_i32 : i32
    %1 = arith.addi %0, %arg1 : i32
    %c0_i32 = arith.constant 0 : i32
    %2 = arith.minsi %1, %c0_i32 : i32
    %c0_i32_0 = arith.constant 0 : i32
    %c0_i32_1 = arith.constant 0 : i32
    return %2, %c0_i32_0 : i32, i32
  }
  func.func @transform_1(%arg0: i32, %arg1: i32) -> (i32, i32) {
    %c1_i32 = arith.constant 1 : i32
    %0 = arith.muli %arg0, %c1_i32 : i32
    %1 = arith.addi %0, %arg1 : i32
    %c0_i32 = arith.constant 0 : i32
    %2 = arith.minsi %1, %c0_i32 : i32
    %c0_i32_0 = arith.constant 0 : i32
    %c0_i32_1 = arith.constant 0 : i32
    return %2, %c0_i32_0 : i32, i32
  }
  func.func @transform_2(%arg0: i32, %arg1: i32) -> (i32, i32, i32) {
    %c0_i32 = arith.constant 0 : i32
    %c0_i32_0 = arith.constant 0 : i32
    %c0_i32_1 = arith.constant 0 : i32
    return %arg0, %c0_i32, %c0_i32_0 : i32, i32, i32
  }
}

</mosaic_0001>

<bundles_post_ra>
// kernel: tpu_custom_call.1
= control target key start
LH: loop header
LB: loop body
LE: loop exit
PB: predicated region body
PF: predicated region fallthrough
CT: control target
= control target key end

     0   :  { %7 = vsyncpa [#allocation3], 0  ;;  %s387_s0 = inlined_call_operand.hbm [shape: f32[32,128], index: 0, kind: input, shape index: {}]   ;;  %s388_s1 = inlined_call_operand.hbm [shape: f32[32,128], index: 1, kind: input, shape index: {}]   ;;  %s389_s2 = inlined_call_operand.hbm [shape: f32[1,8,128], index: 2, kind: output, shape index: {}]  }
   0x1   :  { %8 = vsyncpa [#allocation6], 0 }
   0x2   :  { %9 = vsyncpa [#allocation4], 0  ;;  %s336_s9 = smov [#allocation2]  }
   0x3   :  { %s21_s10 = sshll.u32 %s336_s9, 4  ;;  %s22_s10 = int_to_ptr.vmem [resolvable:$true] %s21_s10 }
   0x4   :  { %s278_s11 = scalar_lea.vmem %s22_s10, 512  ;;  %p283_p1 = scmp.lt.s32.totalorder %s22_s10, %s22_s10 }
   0x5   :  { %p279_p0 = scmp.ne.s32.totalorder %s22_s10, %s278_s11  ;;  %p284_p2 = scmp.lt.s32.totalorder %s278_s11, %s278_s11 }
   0x7   :  { %p285_p3 = por %p284_p2, %p283_p1 }
   0x9   :  { %p286_p4 = pnand %p285_p3, %p279_p0 }
   0xb   :  { %289 = shalt.err (!%p286_p4)
}
   0xc   :  { %s337_s12 = smov 128   ;;  %s338_s13 = smov 8  }
   0xd   :  { %27 = dma.hbm_to_vmem [thread:$0]  %s387_s0, 512, %s22_s10, [#allocation3], %s337_s12, %s337_s12, %s338_s13  }
   0xe   :  { %s339_s16 = smov [#allocation5]  }
   0xf   :  { %s39_s17 = sshll.u32 %s339_s16, 4  ;;  %s40_s17 = int_to_ptr.vmem [resolvable:$true] %s39_s17 }
  0x10   :  { %s298_s18 = scalar_lea.vmem %s40_s17, 512  ;;  %p303_p6 = scmp.lt.s32.totalorder %s40_s17, %s40_s17 }
  0x11   :  { %p299_p5 = scmp.ne.s32.totalorder %s40_s17, %s298_s18  ;;  %p304_p7 = scmp.lt.s32.totalorder %s298_s18, %s298_s18 }
  0x13   :  { %p305_p8 = por %p304_p7, %p303_p6 }
  0x15   :  { %p306_p9 = pnand %p305_p8, %p299_p5 }
  0x17   :  { %309 = shalt.err (!%p306_p9)
}
  0x18   :  { %45 = dma.hbm_to_vmem [thread:$0]  %s388_s1, 512, %s40_s17, [#allocation6], %s337_s12, %s337_s12, %s338_s13  }
  0x19   :  { %330 = dma.done.wait [#allocation3], 512  }
  0x1a   :  { %331 = vsyncadd [#allocation3], 4294966784 }
  0x1b   :  { %332 = dma.done.wait [#allocation6], 512  }
  0x1c   :  { %333 = vsyncadd [#allocation6], 4294966784  ;;  %v65_v0 = vld [vmem:[#allocation2] sm:$0xff]  ;;  %v66_v1 = vld [vmem:[#allocation2 + $0x8] sm:$0xff]  ;;  %s340_s0 = smov [#allocation7]  }
  0x1d   :  { %v362_v2 = vld [vmem:[#allocation2 + $0x10] sm:$0xff]  ;;  %v364_v3 = vld [vmem:[#allocation2 + $0x18] sm:$0xff]  ;;  %v73_v4 = vand.u32 2147483647, %v65_v0  ;;  %v74_v5 = vand.u32 2147483647, %v66_v1 }
  0x1e   :  { %v75_v6 = vand.u32 2147483647, %v362_v2  ;;  %v76_v7 = vand.u32 2147483647, %v364_v3  ;;  %v69_v26 = vld [vmem:[#allocation5] sm:$0xff]  ;;  %v70_v28 = vld [vmem:[#allocation5 + $0x8] sm:$0xff] }
  0x1f   :  { %v77_v8 = vsub.f32 0.0, %v73_v4  ;;  %v78_v9 = vsub.f32 0.0, %v74_v5  ;;  %v71_v29 = vld [vmem:[#allocation5 + $0x10] sm:$0xff]  ;;  %v72_v32 = vld [vmem:[#allocation5 + $0x18] sm:$0xff]  ;;  %v89_v33 = vmax.f32 %v65_v0, 0.0  ;;  %v93_v34 = vmul.f32 %v69_v26, %v65_v0  ;;  %s226_s1 = sshll.u32 %s340_s0, 4  ;;  %s227_s1 = int_to_ptr.vmem [resolvable:$true] %s226_s1 }
  0x20   :  { %v79_v10 = vsub.f32 0.0, %v75_v6  ;;  %v80_v11 = vsub.f32 0.0, %v76_v7  ;;  %v90_v37 = vmax.f32 %v66_v1, 0.0  ;;  %v94_v38 = vmul.f32 %v70_v28, %v66_v1  ;;  %s310_s21 = scalar_lea.vmem %s227_s1, 128  ;;  %p315_p11 = scmp.lt.s32.totalorder %s227_s1, %s227_s1 }
  0x21   :  { %v81_v12 = vmul.f32 1.442695, %v77_v8  ;;  %v83_v13 = vmul.f32 1.442695, %v78_v9  ;;  %v91_v41 = vmax.f32 %v362_v2, 0.0  ;;  %v95_v42 = vmul.f32 %v71_v29, %v362_v2  ;;  %p311_p10 = scmp.ne.s32.totalorder %s227_s1, %s310_s21  ;;  %p316_p12 = scmp.lt.s32.totalorder %s310_s21, %s310_s21 }
  0x22   :  { %v85_v14 = vmul.f32 1.442695, %v79_v10  ;;  %v87_v15 = vmul.f32 1.442695, %v80_v11  ;;  %v92_v44 = vmax.f32 %v364_v3, 0.0  ;;  %v96_v45 = vmul.f32 %v72_v32, %v364_v3 }
  0x23   :  { %246 = vpow2.f32 %v81_v12  ;;  %v97_v49 = vsub.f32 %v89_v33, %v93_v34  ;;  %v98_v54 = vsub.f32 %v90_v37, %v94_v38  ;;  %v99_v59 = vsub.f32 %v91_v41, %v95_v42  ;;  %p317_p13 = por %p316_p12, %p315_p11 }
  0x24   :  { %248 = vpow2.f32 %v83_v13  ;;  %v100_v1 = vsub.f32 %v92_v44, %v96_v45 }
  0x25   :  { %250 = vpow2.f32 %v85_v14  ;;  %p318_p0 = pnand %p317_p13, %p311_p10 }
  0x26   :  { %252 = vpow2.f32 %v87_v15 }
  0x30   :  { %v247_v16 = vpop.eup %246 }
  0x31   :  { %v249_v17 = vpop.eup %248  ;;  %v101_v18 = vadd.f32 1.0, %v247_v16  ;;  %v104_v24 = vmul.f32 -0.5, %v247_v16  ;;  %v107_v35 = vand.u32 2147483647, %v247_v16 }
  0x32   :  { %v251_v19 = vpop.eup %250  ;;  %v110_v20 = vadd.f32 1.0, %v249_v17  ;;  %v113_v25 = vmul.f32 -0.5, %v249_v17  ;;  %v116_v39 = vand.u32 2147483647, %v249_v17 }
  0x33   :  { %v253_v21 = vpop.eup %252  ;;  %254 = vlog2.f32 %v101_v18  ;;  %v119_v22 = vadd.f32 1.0, %v251_v19  ;;  %v122_v27 = vmul.f32 -0.5, %v251_v19  ;;  %v105_v30 = vadd.f32 1.0, %v104_v24 }
  0x34   :  { %256 = vlog2.f32 %v110_v20  ;;  %v128_v23 = vadd.f32 1.0, %v253_v21  ;;  %v131_v31 = vmul.f32 -0.5, %v253_v21  ;;  %v114_v36 = vadd.f32 1.0, %v113_v25 }
  0x35   :  { %258 = vlog2.f32 %v119_v22  ;;  %v123_v40 = vadd.f32 1.0, %v122_v27  ;;  %v125_v43 = vand.u32 2147483647, %v251_v19  ;;  %v106_v46 = vmul.f32 %v247_v16, %v105_v30 }
  0x36   :  { %260 = vlog2.f32 %v128_v23  ;;  %v132_v47 = vadd.f32 1.0, %v131_v31  ;;  %vm372_vm0 = vcmp.lt.f32.partialorder %v107_v35, 0.0004427343  ;;  %v115_v51 = vmul.f32 %v249_v17, %v114_v36 }
  0x37   :  { %v134_v52 = vand.u32 2147483647, %v253_v21  ;;  %vm376_vm1 = vcmp.lt.f32.partialorder %v116_v39, 0.0004427343  ;;  %v124_v57 = vmul.f32 %v251_v19, %v123_v40  ;;  %vm126_vm2 = vcmp.lt.f32.partialorder %v125_v43, 0.0004427343 }
  0x38   :  { %v133_v63 = vmul.f32 %v253_v21, %v132_v47 }
  0x39   :  { %vm135_vm3 = vcmp.lt.f32.partialorder %v134_v52, 0.0004427343 }
  0x40   :  { %v255_v48 = vpop.eup %254 }
  0x41   :  { %v257_v53 = vpop.eup %256  ;;  %v103_v55 = vmul.f32 0.6931472, %v255_v48 }
  0x42   :  { %v259_v58 = vpop.eup %258  ;;  %v112_v60 = vmul.f32 0.6931472, %v257_v53 }
  0x43   :  { %v109_v61 = vsel %vm372_vm0, %v106_v46, %v103_v55  ;;  %v121_v62 = vmul.f32 0.6931472, %v259_v58  ;;  %v261_v0 = vpop.eup %260 }
  0x44   :  { %v118_v2 = vsel %vm376_vm1, %v115_v51, %v112_v60  ;;  %v137_v3 = vadd.f32 %v109_v61, %v97_v49  ;;  %v130_v5 = vmul.f32 0.6931472, %v261_v0 }
  0x45   :  { %v127_v4 = vsel %vm126_vm2, %v124_v57, %v121_v62  ;;  %v138_v6 = vadd.f32 %v118_v2, %v98_v54 }
  0x46   :  { %v139_v7 = vadd.f32 %v127_v4, %v99_v59  ;;  %v141_v8 = vsub.f32 0.0, %v137_v3  ;;  %v136_v9 = vsel %vm135_vm3, %v133_v63, %v130_v5 }
  0x47   :  { %v142_v10 = vsub.f32 0.0, %v138_v6  ;;  %v140_v11 = vadd.f32 %v136_v9, %v100_v1 }
  0x48   :  { %v143_v12 = vsub.f32 0.0, %v139_v7  ;;  %v145_v13 = vmul.f32 1.442695, %v141_v8 }
  0x49   :  { %v147_v14 = vmul.f32 1.442695, %v142_v10  ;;  %v144_v15 = vsub.f32 0.0, %v140_v11 }
  0x4a   :  { %262 = vpow2.f32 %v145_v13  ;;  %v149_v16 = vmul.f32 1.442695, %v143_v12 }
  0x4b   :  { %264 = vpow2.f32 %v147_v14  ;;  %v151_v17 = vmul.f32 1.442695, %v144_v15 }
  0x4c   :  { %266 = vpow2.f32 %v149_v16 }
  0x4d   :  { %268 = vpow2.f32 %v151_v17 }
  0x57   :  { %v263_v18 = vpop.eup %262 }
  0x58   :  { %v265_v19 = vpop.eup %264  ;;  %v153_v20 = vsub.f32 1.0, %v263_v18 }
  0x59   :  { %v267_v21 = vpop.eup %266  ;;  %v154_v22 = vsub.f32 1.0, %v265_v19 }
  0x5a   :  { %v155_v23 = vsub.f32 1.0, %v267_v21  ;;  %v157_v24 = vmul.f32 %v153_v20, %v153_v20  ;;  %v269_v25 = vpop.eup %268 }
  0x5b   :  { %v158_v26 = vmul.f32 %v154_v22, %v154_v22  ;;  %v156_v27 = vsub.f32 1.0, %v269_v25 }
  0x5c   :  { %v159_v28 = vmul.f32 %v155_v23, %v155_v23  ;;  %v161_v29 = vmul.f32 0.75, %v157_v24 }
  0x5d   :  { %v162_v30 = vmul.f32 0.75, %v158_v26  ;;  %v160_v31 = vmul.f32 %v156_v27, %v156_v27 }
  0x5e   :  { %v163_v32 = vmul.f32 0.75, %v159_v28  ;;  %v165_v33 = vmul.f32 %v161_v29, %v137_v3 }
  0x5f   :  { %v166_v34 = vmul.f32 %v162_v30, %v138_v6  ;;  %v164_v35 = vmul.f32 0.75, %v160_v31 }
  0x60   :  { %v167_v36 = vmul.f32 %v163_v32, %v139_v7 }
  0x61   :  { %v178_v37 = vadd.f32 %v166_v34, %v165_v33  ;;  %v168_v38 = vmul.f32 %v164_v35, %v140_v11 }
  0x63   :  { %v179_v39 = vadd.f32 %v178_v37, %v167_v36 }
  0x65   :  { %v180_v40 = vadd.f32 %v179_v39, %v168_v38 }
  0x67   :  { %182 = vst [vmem:[#allocation7] sm:$0xff] %v180_v40 }
  0x68   :  { %321 = shalt.err (!%p318_p0)
}
  0x69   :  { %229 = dma.vmem_to_hbm [thread:$0]  %s227_s1, 128, %s389_s2, [#allocation4]  }
  0x6a   :  { %334 = dma.done.wait [#allocation4], 128  }
  0x6b   :  { %335 = vsyncadd [#allocation4], 4294967168 }
  0x6c   :  { %233 = vsyncpa [#allocation3], 1 }
  0x6d   :  { %234 = vsyncpa [#allocation6], 1 }
  0x6e   :  { %235 = vsyncpa [#allocation4], 1 }

</bundles_post_ra>
